<compile_context>
chip_gen: v5e
topology: v5e:2x2
jax: 0.10.0
libtpu: 0.0.40
codegen_flags: <defaults>
</compile_context>

<pallas_src>
import jax
import jax.numpy as jnp
from jax.experimental import pallas as pl
from jax.experimental.pallas import tpu as pltpu

_MIB = 1 << 20


def _round_up(x: int, m: int) -> int:
    return ((x + m - 1) // m) * m


def _sublane_multiple(dtype) -> int:
    # Packed-tile second-to-last-dim multiple: 8 for f32, 16 for bf16, 32 for int8/fp8.
    itemsize = jnp.dtype(dtype).itemsize
    return max(8, 32 // max(1, itemsize))


def _vmem_capacity_bytes() -> int:
    """Generation-aware VMEM size; falls back to the most constrained chip (v7x)."""
    try:
        cap = int(getattr(pltpu.get_tpu_info(), "vmem_capacity_bytes", 0))
        if cap >= 16 * _MIB:
            return cap
    except Exception:
        pass
    return 64 * _MIB


def _budgets(vmem_cap: int):
    # Usable scoped VMEM: leave >=16 MiB headroom for compiler-internal scratch
    # (matters on v7x's 64 MiB), never more than ~70% of physical.
    usable = max(24 * _MIB, min(vmem_cap - 16 * _MIB, int(0.70 * vmem_cap)))
    # Per-step output block target: big enough to amortise ~0.35us step overhead,
    # small enough that 2x out + 2x in double buffers fit `usable`.
    out_block_budget = max(2 * _MIB, min(usable // 4, 16 * _MIB))
    return usable, out_block_budget


def _pos_embed_bcast_kernel(w_ref, out_ref):
    # Path A: w_ref (ts, d_model)  -> out_ref (Bb, ts, d_model)
    # Path B: w_ref (1, tl)        -> out_ref (Bb, tl)
    # One hoisted broadcast: the W_pos tile is read from VMEM once per grid step
    # and written to all Bb batch rows of the output block.
    out_ref[...] = jnp.broadcast_to(w_ref[...], out_ref.shape)


def _pos_embed_blocked(w_pos: jax.Array, batch: int, seq: int) -> jax.Array:
    """Path A: d_model is lane-aligned; keep the natural 3-D layout."""
    n_ctx, d_model = w_pos.shape
    dtype = w_pos.dtype
    itemsize = jnp.dtype(dtype).itemsize
    sub = _sublane_multiple(dtype)
    usable, out_budget = _budgets(_vmem_capacity_bytes())

    row_bytes = d_model * itemsize
    seq_pad = _round_up(seq, sub)

    # Fast path: whole W_pos[:seq] slice resident as a single tile when small.
    if seq_pad * row_bytes <= max(8 * _MIB, out_budget):
        ts = seq_pad
    else:
        ts = max(sub, (out_budget // row_bytes) // sub * sub)
        ts = min(ts, seq_pad)

    # Batch rows per output block (leading dim of a 3-D block: no alignment rule).
    bb = max(1, min(batch, out_budget // (ts * row_bytes)))

    in_bytes = ts * row_bytes
    out_bytes = bb * ts * row_bytes
    vmem_limit = int(max(32 * _MIB, min(usable, 2 * (in_bytes + out_bytes) + 8 * _MIB)))

    grid = (pl.cdiv(seq, ts), pl.cdiv(batch, bb))
    return pl.pallas_call(
        _pos_embed_bcast_kernel,
        out_shape=jax.ShapeDtypeStruct((batch, seq, d_model), dtype),
        grid_spec=pltpu.PrefetchScalarGridSpec(
            num_scalar_prefetch=0,
            grid=grid,
            # Batch is the inner (fastest) axis: W_pos block index (s, 0) is constant
            # across it, so each seq tile is fetched from HBM exactly once.
            in_specs=[pl.BlockSpec((ts, d_model), lambda s, b: (s, 0))],
            out_specs=pl.BlockSpec((bb, ts, d_model), lambda s, b: (b, s, 0)),
        ),
        compiler_params=pltpu.CompilerParams(
            dimension_semantics=("parallel", "parallel"),
            vmem_limit_bytes=vmem_limit,
        ),
    )(w_pos)


def _pos_embed_flat(w_pos: jax.Array, batch: int, seq: int) -> jax.Array:
    """Path B: d_model % 128 != 0 -> lane-dense flattened output (no masked stores)."""
    n_ctx, d_model = w_pos.shape
    dtype = w_pos.dtype
    itemsize = jnp.dtype(dtype).itemsize
    sub = _sublane_multiple(dtype)
    usable, out_budget = _budgets(_vmem_capacity_bytes())

    L = seq * d_model
    # Tiny wrapper-side slice+reshape (<= seq*d_model bytes) vs. batch x that on writeback.
    pos_flat = w_pos[:seq].reshape(1, L)

    # Per-batch-row flat tile, leaving room for a >= sub batch block when batch > sub.
    max_bb_needed = batch if batch <= sub else sub
    row_budget = max(128 * itemsize, out_budget // max_bb_needed)
    if L * itemsize <= row_budget:
        tl = L  # full flat row: legal block dim regardless of 128-divisibility
    else:
        tl = max(128, ((row_budget // itemsize) // 128) * 128)  # lane-aligned tile

    bb = max(1, out_budget // (tl * itemsize))
    if bb >= batch:
        bb = batch
    else:
        bb = max(sub, (bb // sub) * sub)  # second-to-last dim of a 2-D block
        if bb >= batch:
            bb = batch

    in_bytes = tl * itemsize
    out_bytes = bb * tl * itemsize
    vmem_limit = int(max(32 * _MIB, min(usable, 2 * (in_bytes + out_bytes) + 8 * _MIB)))

    grid = (pl.cdiv(L, tl), pl.cdiv(batch, bb))
    out_flat = pl.pallas_call(
        _pos_embed_bcast_kernel,
        out_shape=jax.ShapeDtypeStruct((batch, L), dtype),
        grid_spec=pltpu.PrefetchScalarGridSpec(
            num_scalar_prefetch=0,
            grid=grid,
            in_specs=[pl.BlockSpec((1, tl), lambda f, b: (0, f))],
            out_specs=pl.BlockSpec((bb, tl), lambda f, b: (b, f)),
        ),
        compiler_params=pltpu.CompilerParams(
            dimension_semantics=("parallel", "parallel"),
            vmem_limit_bytes=vmem_limit,
        ),
    )(pos_flat)
    # Contiguous reshape back to (batch, seq, d_model) — layout-free in the wrapper.
    return out_flat.reshape(batch, seq, d_model)


def pos_embed(tokens: jax.Array, w_pos: jax.Array) -> jax.Array:
    """Equivalent of PosEmbed.forward: W_pos[:tokens.shape[1]] broadcast over batch."""
    batch, seq = tokens.shape
    n_ctx, d_model = w_pos.shape
    assert seq <= n_ctx
    if d_model % 128 == 0:
        return _pos_embed_blocked(w_pos, batch, seq)
    return _pos_embed_flat(w_pos, batch, seq)


if __name__ == "__main__":
    init_range = 0.02
    key = jax.random.PRNGKey(0)
    k_w1, k_t1, k_w2, k_t2 = jax.random.split(key, 4)

    # Case 1: small shapes consistent with the module; d_model=32 (<128) exercises
    # the lane-dense flattened path.
    batch, seq, n_ctx, d_model = 2, 8, 16, 32
    W_pos = (init_range * jax.random.normal(k_w1, (n_ctx, d_model))).astype(jnp.float32)
    tokens = jax.random.randint(k_t1, (batch, seq), 0, 100, dtype=jnp.int32)
    out = jax.block_until_ready(pos_embed(tokens, W_pos))
    ref = jnp.broadcast_to(W_pos[:seq][None], (batch, seq, d_model))
    assert out.shape == (batch, seq, d_model)
    assert out.dtype == W_pos.dtype
    assert jnp.array_equal(out, ref)

    # Case 2: lane-aligned d_model with a non-multiple-of-8 seq — exercises the 3-D
    # blocked path plus partial-block clipping on both read and writeback.
    batch2, seq2, n_ctx2, d_model2 = 2, 12, 16, 128
    W_pos2 = (init_range * jax.random.normal(k_w2, (n_ctx2, d_model2))).astype(jnp.float32)
    tokens2 = jax.random.randint(k_t2, (batch2, seq2), 0, 100, dtype=jnp.int32)
    out2 = jax.block_until_ready(pos_embed(tokens2, W_pos2))
    ref2 = jnp.broadcast_to(W_pos2[:seq2][None], (batch2, seq2, d_model2))
    assert jnp.array_equal(out2, ref2)

    print("KERNEL_OK")
</pallas_src>

<mosaic_0001>
module attributes {stable_mosaic.version = 11 : i64} {
  func.func @_pos_embed_bcast_kernel(%arg0: i32, %arg1: i32, %arg2: memref<1x256xf32, #tpu.memory_space<vmem>>, %arg3: memref<2x256xf32, #tpu.memory_space<vmem>>) attributes {dimension_semantics = [#tpu.dimension_semantics<parallel>, #tpu.dimension_semantics<parallel>], iteration_bounds = array<i64: 1, 1>, scalar_prefetch = 0 : i64, scratch_operands = 0 : i64, tpu.core_type = #tpu.core_type<tc>, window_params = [{transform_indices = @transform_0, window_bounds = array<i64: 1, 256>}, {transform_indices = @transform_1, window_bounds = array<i64: 2, 256>}]} {
    %c0 = arith.constant 0 : index
    %c0_0 = arith.constant 0 : index
    %0 = vector.load %arg2[%c0, %c0_0] : memref<1x256xf32, #tpu.memory_space<vmem>>, vector<1x256xf32>
    %1 = vector.shape_cast %0 : vector<1x256xf32> to vector<1x256xf32>
    %2 = vector.broadcast %1 : vector<1x256xf32> to vector<2x256xf32>
    %c0_1 = arith.constant 0 : index
    %c0_2 = arith.constant 0 : index
    %3 = vector.load %arg3[%c0_1, %c0_2] : memref<2x256xf32, #tpu.memory_space<vmem>>, vector<2x256xf32>
    tpu.vector_store %arg3[%c0_1, %c0_2], %2 {strides = array<i32>} : memref<2x256xf32, #tpu.memory_space<vmem>>, vector<2x256xf32>,
    return
  }
  func.func @transform_0(%arg0: i32, %arg1: i32) -> (i32, i32) {
    %c0_i32 = arith.constant 0 : i32
    %c0_i32_0 = arith.constant 0 : i32
    return %c0_i32, %arg0 : i32, i32
  }
  func.func @transform_1(%arg0: i32, %arg1: i32) -> (i32, i32) {
    %c0_i32 = arith.constant 0 : i32
    return %arg1, %arg0 : i32, i32
  }
}

</mosaic_0001>

<bundles_post_ra>
// kernel: tpu_custom_call.1
= control target key start
LH: loop header
LB: loop body
LE: loop exit
PB: predicated region body
PF: predicated region fallthrough
CT: control target
= control target key end

     0   :  { %6 = vsyncpa [#allocation3], 0  ;;  %s121_s0 = inlined_call_operand.hbm [shape: f32[1,256], index: 0, kind: input, shape index: {}]   ;;  %s122_s1 = inlined_call_operand.hbm [shape: f32[2,256], index: 1, kind: output, shape index: {}]  }
   0x1   :  { %7 = vsyncpa [#allocation4], 0  ;;  %s13_s8 = sshll.u32 %s121_s0, 4  ;;  %s103_s9 = smov [#allocation2]   ;;  %s14_s8 = int_to_ptr.hbm [resolvable:$true] %s13_s8 }
   0x2   :  { %s15_s10 = sshll.u32 %s103_s9, 4  ;;  %s16_s10 = int_to_ptr.vmem [resolvable:$true] %s15_s10 }
   0x3   :  { %18 = dma.hbm_to_vmem [thread:$0]  %s14_s8, 32, %s16_s10, [#allocation3]  }
   0x4   :  { %99 = dma.done.wait [#allocation3], 32  }
   0x5   :  { %100 = vsyncadd [#allocation3], 4294967264  ;;  %v23_v0 = vld [vmem:[#allocation2] sm:$0x3]  ;;  %s104_s11 = smov [#allocation5]   ;;  %s39_s15 = sshll.u32 %s122_s1, 4  ;;  %s40_s15 = int_to_ptr.hbm [resolvable:$true] %s39_s15 }
   0x6   :  { %v25_v1 = vperm.slane %v23_v0, 0  ;;  %v26_v2 = vperm.slane %v23_v0, 1  ;;  %s37_s12 = sshll.u32 %s104_s11, 4  ;;  %vm28_vm0 = vcmask 1041408   ;;  %s38_s12 = int_to_ptr.vmem [resolvable:$true] %s37_s12 }
   0x8   :  { %v27_v3 = vrot.slane %v26_v2, 6 }
   0xa   :  { %v29_v4 = vsel %vm28_vm0, %v25_v1, %v27_v3 }
   0xb   :  { %31 = vst [vmem:[#allocation5] sm:$0xf] %v29_v4 }
   0xc   :  { %42 = dma.vmem_to_hbm [thread:$0]  %s38_s12, 64, %s40_s15, [#allocation4]  }
   0xd   :  { %101 = dma.done.wait [#allocation4], 64  }
   0xe   :  { %102 = vsyncadd [#allocation4], 4294967232 }
   0xf   :  { %47 = vsyncpa [#allocation3], 1 }
  0x10   :  { %48 = vsyncpa [#allocation4], 1 }

</bundles_post_ra>
